<compile_context>
chip_gen: v5e
topology: v5e:2x2
jax: 0.10.0
libtpu: 0.0.40
codegen_flags: <defaults>
</compile_context>

<pallas_src>
import math

import jax
import jax.numpy as jnp
from jax.experimental import pallas as pl
from jax.experimental.pallas import tpu as pltpu


def _cdiv(a, b):
    return (a + b - 1) // b


def _round_up(x, m):
    return _cdiv(x, m) * m


def _activation_loss_kernel(zero_ref, one_ref, labels_ref, out_ref, acc_ref):
    step = pl.program_id(1)

    @pl.when(step == 0)
    def _init():
        acc_ref[...] = jnp.zeros_like(acc_ref)

    # Upcast in-kernel (inputs stream from HBM in their native dtype).
    labels = labels_ref[...].astype(jnp.float32)
    one = one_ref[...].astype(jnp.float32)
    zero = zero_ref[...].astype(jnp.float32)

    loss = jnp.abs(one - labels) + jnp.abs(zero - (1.0 - labels))

    tb, lanes = loss.shape
    # Fold the (tb, lanes) tile onto the resident (8, lanes) accumulator with
    # pure VPU adds; no cross-lane (XLU) reduction on the per-iteration path.
    acc_ref[...] += loss.reshape(tb // 8, 8, lanes).sum(axis=0)

    @pl.when(step == pl.num_programs(1) - 1)
    def _finalize():
        # Each core emits its (8, lanes) partial once; the tiny final
        # cross-lane sum happens in the wrapper.
        out_ref[0] = acc_ref[...]


def activation_loss(zero, one, labels, *, max_lanes=512, max_block_rows=512):
    """Pallas implementation of ActivationLoss.forward."""
    assert zero.shape == one.shape == labels.shape
    batch = labels.shape[0]
    total = int(math.prod(labels.shape))

    # Lane-dense layout: lanes is a multiple of 128, capped at 512.
    lanes = min(max_lanes, _round_up(total, 128))
    rows_needed = _cdiv(total, lanes)
    tb = min(max_block_rows, _round_up(rows_needed, 8))       # multiple of 8
    # Split rows across the two TensorCores (v7x) when there is >1 block of
    # real data; harmless (size-1) otherwise and on single-core chips.
    n_cores = 2 if rows_needed > tb else 1
    inner = _cdiv(rows_needed, n_cores * tb)
    rows = n_cores * inner * tb
    n_pad = rows * lanes

    def prep(x, pad_value):
        flat = x.reshape(-1)
        if n_pad > total:
            flat = jnp.pad(flat, (0, n_pad - total), constant_values=pad_value)
        return flat.reshape(rows, lanes)

    # Pad values chosen so padding contributes exactly zero loss:
    #   |one - labels| + |zero - (1 - labels)| = |0 - 0| + |1 - 1| = 0
    z2 = prep(zero, 1)
    o2 = prep(one, 0)
    l2 = prep(labels, 0)

    # VMEM budget: 3 inputs x 2 pipeline buffers x tile + accumulator + slack.
    in_bytes = 2 * tb * lanes * sum(
        jnp.dtype(a.dtype).itemsize for a in (z2, o2, l2))
    vmem_limit = int(min(64 << 20, max(32 << 20,
                                       in_bytes + 8 * lanes * 4 + (4 << 20))))

    in_map = lambda c, i: (c * inner + i, 0)

    partials = pl.pallas_call(
        _activation_loss_kernel,
        out_shape=jax.ShapeDtypeStruct((n_cores, 8, lanes), jnp.float32),
        grid_spec=pltpu.PrefetchScalarGridSpec(
            num_scalar_prefetch=0,
            grid=(n_cores, inner),
            in_specs=[
                pl.BlockSpec((tb, lanes), in_map),
                pl.BlockSpec((tb, lanes), in_map),
                pl.BlockSpec((tb, lanes), in_map),
            ],
            out_specs=pl.BlockSpec((1, 8, lanes), lambda c, i: (c, 0, 0)),
            scratch_shapes=[pltpu.VMEM((8, lanes), jnp.float32)],
        ),
        compiler_params=pltpu.CompilerParams(
            dimension_semantics=("parallel", "arbitrary"),
            vmem_limit_bytes=vmem_limit,
        ),
    )(z2, o2, l2)

    return jnp.sum(partials) * (1.0 / batch)


def activation_loss_ref(zero, one, labels):
    zero = zero.astype(jnp.float32)
    one = one.astype(jnp.float32)
    labels = labels.astype(jnp.float32)
    loss = jnp.abs(one - labels) + jnp.abs(zero - (1.0 - labels))
    return jnp.sum(loss) * (1.0 / labels.shape[0])


if __name__ == "__main__":
    key = jax.random.PRNGKey(0)
    k0, k1, k2 = jax.random.split(key, 3)

    # Small shapes consistent with the module: batch=8, features=16, float32.
    B, F = 8, 16
    zero = jax.random.uniform(k0, (B, F), dtype=jnp.float32)
    one = jax.random.uniform(k1, (B, F), dtype=jnp.float32)
    labels = (jax.random.uniform(k2, (B, F)) > 0.5).astype(jnp.float32)

    out = activation_loss(zero, one, labels)
    jax.block_until_ready(out)
    ref = activation_loss_ref(zero, one, labels)
    assert jnp.allclose(out, ref, rtol=1e-5, atol=1e-5), (out, ref)

    # Also exercise the tiled multi-step / two-partial path with native bf16
    # inputs (non-multiple-of-128 feature dim, padded tail block).
    kb0, kb1, kb2 = jax.random.split(jax.random.PRNGKey(1), 3)
    B2, F2 = 32, 300
    zero2 = jax.random.uniform(kb0, (B2, F2), dtype=jnp.float32).astype(jnp.bfloat16)
    one2 = jax.random.uniform(kb1, (B2, F2), dtype=jnp.float32).astype(jnp.bfloat16)
    labels2 = (jax.random.uniform(kb2, (B2, F2)) > 0.5).astype(jnp.bfloat16)
    out2 = activation_loss(zero2, one2, labels2, max_block_rows=8)
    jax.block_until_ready(out2)
    ref2 = activation_loss_ref(zero2, one2, labels2)
    assert jnp.allclose(out2, ref2, rtol=1e-4, atol=1e-4), (out2, ref2)

    print("KERNEL_OK")
</pallas_src>

<mosaic_0001>
module attributes {stable_mosaic.version = 11 : i64} {
  func.func @_activation_loss_kernel(%arg0: i32, %arg1: i32, %arg2: memref<8x128xf32, #tpu.memory_space<vmem>>, %arg3: memref<8x128xf32, #tpu.memory_space<vmem>>, %arg4: memref<8x128xf32, #tpu.memory_space<vmem>>, %arg5: memref<1x8x128xf32, #tpu.memory_space<vmem>>, %arg6: memref<8x128xf32, #tpu.memory_space<vmem>>) attributes {dimension_semantics = [#tpu.dimension_semantics<parallel>, #tpu.dimension_semantics<arbitrary>], iteration_bounds = array<i64: 1, 1>, scalar_prefetch = 0 : i64, scratch_operands = 1 : i64, tpu.core_type = #tpu.core_type<tc>, window_params = [{transform_indices = @transform_0, window_bounds = array<i64: 8, 128>}, {transform_indices = @transform_1, window_bounds = array<i64: 8, 128>}, {transform_indices = @transform_2, window_bounds = array<i64: 8, 128>}, {transform_indices = @transform_3, window_bounds = array<i64: 1, 8, 128>}]} {
    %c0_i32 = arith.constant 0 : i32
    %0 = arith.cmpi eq, %arg1, %c0_i32 : i32
    %1 = arith.extui %0 : i1 to i32
    %c0_i32_0 = arith.constant 0 : i32
    %2 = arith.cmpi ne, %1, %c0_i32_0 : i32
    scf.if %2 {
      %cst_13 = arith.constant 0.000000e+00 : f32
      %21 = vector.broadcast %cst_13 : f32 to vector<8x128xf32>
      %c0_14 = arith.constant 0 : index
      %c0_15 = arith.constant 0 : index
      %22 = vector.load %arg6[%c0_14, %c0_15] : memref<8x128xf32, #tpu.memory_space<vmem>>, vector<8x128xf32>
      tpu.vector_store %arg6[%c0_14, %c0_15], %21 {strides = array<i32>} : memref<8x128xf32, #tpu.memory_space<vmem>>, vector<8x128xf32>,
    } else {
    }
    %c0 = arith.constant 0 : index
    %c0_1 = arith.constant 0 : index
    %3 = vector.load %arg4[%c0, %c0_1] : memref<8x128xf32, #tpu.memory_space<vmem>>, vector<8x128xf32>
    %c0_2 = arith.constant 0 : index
    %c0_3 = arith.constant 0 : index
    %4 = vector.load %arg3[%c0_2, %c0_3] : memref<8x128xf32, #tpu.memory_space<vmem>>, vector<8x128xf32>
    %c0_4 = arith.constant 0 : index
    %c0_5 = arith.constant 0 : index
    %5 = vector.load %arg2[%c0_4, %c0_5] : memref<8x128xf32, #tpu.memory_space<vmem>>, vector<8x128xf32>
    %6 = arith.subf %4, %3 : vector<8x128xf32>
    %7 = math.absf %6 : vector<8x128xf32>
    %cst = arith.constant 1.000000e+00 : f32
    %8 = vector.broadcast %cst : f32 to vector<8x128xf32>
    %9 = arith.subf %8, %3 : vector<8x128xf32>
    %10 = arith.subf %5, %9 : vector<8x128xf32>
    %11 = math.absf %10 : vector<8x128xf32>
    %12 = arith.addf %7, %11 : vector<8x128xf32>
    %c0_6 = arith.constant 0 : index
    %c0_7 = arith.constant 0 : index
    %13 = vector.load %arg6[%c0_6, %c0_7] : memref<8x128xf32, #tpu.memory_space<vmem>>, vector<8x128xf32>
    %14 = vector.shape_cast %12 : vector<8x128xf32> to vector<1x8x128xf32>
    %cst_8 = arith.constant dense<0.000000e+00> : vector<8x128xf32>
    %15 = vector.multi_reduction <add>, %14, %cst_8 [0] : vector<1x8x128xf32> to vector<8x128xf32>
    %16 = arith.addf %13, %15 : vector<8x128xf32>
    %c0_9 = arith.constant 0 : index
    %c0_10 = arith.constant 0 : index
    %17 = vector.load %arg6[%c0_9, %c0_10] : memref<8x128xf32, #tpu.memory_space<vmem>>, vector<8x128xf32>
    tpu.vector_store %arg6[%c0_9, %c0_10], %16 {strides = array<i32>} : memref<8x128xf32, #tpu.memory_space<vmem>>, vector<8x128xf32>,
    %c0_i32_11 = arith.constant 0 : i32
    %18 = arith.cmpi eq, %arg1, %c0_i32_11 : i32
    %19 = arith.extui %18 : i1 to i32
    %c0_i32_12 = arith.constant 0 : i32
    %20 = arith.cmpi ne, %19, %c0_i32_12 : i32
    scf.if %20 {
      %c0_13 = arith.constant 0 : index
      %c0_14 = arith.constant 0 : index
      %21 = vector.load %arg6[%c0_13, %c0_14] : memref<8x128xf32, #tpu.memory_space<vmem>>, vector<8x128xf32>
      %c0_15 = arith.constant 0 : index
      %c0_16 = arith.constant 0 : index
      %c0_17 = arith.constant 0 : index
      %22 = vector.load %arg5[%c0_15, %c0_16, %c0_17] : memref<1x8x128xf32, #tpu.memory_space<vmem>>, vector<1x8x128xf32>
      %23 = vector.shape_cast %22 : vector<1x8x128xf32> to vector<8x128xf32>
      %24 = vector.shape_cast %21 : vector<8x128xf32> to vector<1x8x128xf32>
      tpu.vector_store %arg5[%c0_15, %c0_16, %c0_17], %24 {strides = array<i32>} : memref<1x8x128xf32, #tpu.memory_space<vmem>>, vector<1x8x128xf32>,
    } else {
    }
    return
  }
  func.func @transform_0(%arg0: i32, %arg1: i32) -> (i32, i32) {
    %c1_i32 = arith.constant 1 : i32
    %0 = arith.muli %arg0, %c1_i32 : i32
    %1 = arith.addi %0, %arg1 : i32
    %c0_i32 = arith.constant 0 : i32
    %c0_i32_0 = arith.constant 0 : i32
    return %1, %c0_i32 : i32, i32
  }
  func.func @transform_1(%arg0: i32, %arg1: i32) -> (i32, i32) {
    %c1_i32 = arith.constant 1 : i32
    %0 = arith.muli %arg0, %c1_i32 : i32
    %1 = arith.addi %0, %arg1 : i32
    %c0_i32 = arith.constant 0 : i32
    %c0_i32_0 = arith.constant 0 : i32
    return %1, %c0_i32 : i32, i32
  }
  func.func @transform_2(%arg0: i32, %arg1: i32) -> (i32, i32) {
    %c1_i32 = arith.constant 1 : i32
    %0 = arith.muli %arg0, %c1_i32 : i32
    %1 = arith.addi %0, %arg1 : i32
    %c0_i32 = arith.constant 0 : i32
    %c0_i32_0 = arith.constant 0 : i32
    return %1, %c0_i32 : i32, i32
  }
  func.func @transform_3(%arg0: i32, %arg1: i32) -> (i32, i32, i32) {
    %c0_i32 = arith.constant 0 : i32
    %c0_i32_0 = arith.constant 0 : i32
    %c0_i32_1 = arith.constant 0 : i32
    return %arg0, %c0_i32, %c0_i32_0 : i32, i32, i32
  }
}

</mosaic_0001>

<bundles_post_ra>
// kernel: tpu_custom_call.1
= control target key start
LH: loop header
LB: loop body
LE: loop exit
PB: predicated region body
PF: predicated region fallthrough
CT: control target
= control target key end

     0   :  { %8 = vsyncpa [#allocation4], 0  ;;  %s251_s0 = inlined_call_operand.hbm [shape: f32[8,128], index: 0, kind: input, shape index: {}]   ;;  %s252_s1 = inlined_call_operand.hbm [shape: f32[8,128], index: 1, kind: input, shape index: {}]   ;;  %s253_s2 = inlined_call_operand.hbm [shape: f32[8,128], index: 2, kind: input, shape index: {}]   ;;  %s254_s3 = inlined_call_operand.hbm [shape: f32[1,8,128], index: 3, kind: output, shape index: {}]  }
   0x1   :  { %9 = vsyncpa [#allocation7], 0  ;;  %s33_s14 = sshll.u32 %s252_s1, 4  ;;  %s34_s14 = int_to_ptr.hbm [resolvable:$true] %s33_s14 }
   0x2   :  { %10 = vsyncpa [#allocation5], 0  ;;  %s215_s15 = smov [#allocation6]   ;;  %s19_s19 = sshll.u32 %s251_s0, 4  ;;  %s20_s19 = int_to_ptr.hbm [resolvable:$true] %s19_s19 }
   0x3   :  { %s35_s16 = sshll.u32 %s215_s15, 4  ;;  %s216_s20 = smov [#allocation3]   ;;  %s36_s16 = int_to_ptr.vmem [resolvable:$true] %s35_s16 }
   0x4   :  { %38 = dma.hbm_to_vmem [thread:$0]  %s34_s14, 128, %s36_s16, [#allocation7]  }
   0x5   :  { %s21_s21 = sshll.u32 %s216_s20, 4  ;;  %s47_s24 = sshll.u32 %s253_s2, 4  ;;  %s22_s21 = int_to_ptr.vmem [resolvable:$true] %s21_s21  ;;  %s48_s24 = int_to_ptr.hbm [resolvable:$true] %s47_s24 }
   0x6   :  { %24 = dma.hbm_to_vmem [thread:$0]  %s20_s19, 128, %s22_s21, [#allocation4]  }
   0x7   :  { %s217_s1 = smov [#allocation8]  }
   0x8   :  { %s49_s25 = sshll.u32 %s217_s1, 4  ;;  %s50_s25 = int_to_ptr.vmem [resolvable:$true] %s49_s25 }
   0x9   :  { %52 = dma.hbm_to_vmem [thread:$0]  %s48_s24, 128, %s50_s25, [#allocation7]  }
   0xa   :  { %209 = dma.done.wait [#allocation4], 128  }
   0xb   :  { %210 = vsyncadd [#allocation4], 4294967168 }
   0xc   :  { %211 = dma.done.wait [#allocation7], 256  }
   0xd   :  { %212 = vsyncadd [#allocation7], 4294967040  ;;  %v73_v0 = vld [vmem:[#allocation8] sm:$0xff]  ;;  %v74_v1 = vld [vmem:[#allocation6] sm:$0xff]  ;;  %s218_s0 = smov [#allocation9]   ;;  %s98_s28 = sshll.u32 %s254_s3, 4  ;;  %s99_s28 = int_to_ptr.hbm [resolvable:$true] %s98_s28 }
   0xe   :  { %v75_v2 = vld [vmem:[#allocation3] sm:$0xff]  ;;  %v76_v3 = vsub.f32 %v74_v1, %v73_v0  ;;  %v78_v4 = vsub.f32 1.0, %v73_v0  ;;  %s96_s2 = sshll.u32 %s218_s0, 4  ;;  %s97_s2 = int_to_ptr.vmem [resolvable:$true] %s96_s2 }
  0x10   :  { %v77_v5 = vand.u32 2147483647, %v76_v3  ;;  %v79_v6 = vsub.f32 %v75_v2, %v78_v4 }
  0x12   :  { %v80_v7 = vand.u32 2147483647, %v79_v6 }
  0x14   :  { %v81_v8 = vadd.f32 %v80_v7, %v77_v5 }
  0x16   :  { %90 = vst [vmem:[#allocation9] sm:$0xff] %v81_v8 }
  0x17   :  { %101 = dma.vmem_to_hbm [thread:$0]  %s97_s2, 128, %s99_s28, [#allocation5]  }
  0x18   :  { %213 = dma.done.wait [#allocation5], 128  }
  0x19   :  { %214 = vsyncadd [#allocation5], 4294967168 }
  0x1a   :  { %106 = vsyncpa [#allocation4], 1 }
  0x1b   :  { %107 = vsyncpa [#allocation7], 1 }
  0x1c   :  { %108 = vsyncpa [#allocation5], 1 }

</bundles_post_ra>
